<compile_context>
chip_gen: v5e
topology: v5e:2x2
jax: 0.10.0
libtpu: 0.0.40
codegen_flags: <defaults>
</compile_context>

<pallas_src>
import functools

import jax
import jax.numpy as jnp
from jax import lax
from jax.experimental import pallas as pl
from jax.experimental.pallas import tpu as pltpu


def _round_up(x, m):
    return ((x + m - 1) // m) * m


def _ffn_kernel(x_ref, w1_ref, b1_ref, w2_ref, b2_ref, o_ref, acc_ref, *, mxu_dtype):
    # x_ref  : [TM, dim_p]
    # w1_ref : [TH, dim_p]   (torch layout: out-features x in-features)
    # b1_ref : [1,  TH]
    # w2_ref : [dim_p, TH]   (torch layout)
    # b2_ref : [1,  dim_p]
    # o_ref  : [TM, dim_p]   lane-dense output tile
    # acc_ref: [TM, dim_p]   f32 scratch, carried across the hidden grid axis
    k = pl.program_id(1)

    @pl.when(k == 0)
    def _init():
        acc_ref[...] = jnp.zeros_like(acc_ref)

    x = x_ref[...].astype(mxu_dtype)

    # First linear (this hidden slice): h = x @ w1_tile^T + b1_tile  -> [TM, TH], f32.
    h = lax.dot_general(
        x,
        w1_ref[...].astype(mxu_dtype),
        dimension_numbers=(((1,), (1,)), ((), ())),
        preferred_element_type=jnp.float32,
    ) + b1_ref[...].astype(jnp.float32)

    # Exact (erf-based) GELU in f32, matching torch.nn.GELU(approximate='none').
    h = 0.5 * h * (1.0 + lax.erf(h * jnp.float32(0.7071067811865476)))

    # Second linear partial sum: acc += h @ w2_tile^T  -> [TM, dim_p], f32 accumulate.
    acc_ref[...] += lax.dot_general(
        h.astype(mxu_dtype),
        w2_ref[...].astype(mxu_dtype),
        dimension_numbers=(((1,), (1,)), ((), ())),
        preferred_element_type=jnp.float32,
    )

    @pl.when(k == pl.num_programs(1) - 1)
    def _finalize():
        o_ref[...] = (acc_ref[...] + b2_ref[...].astype(jnp.float32)).astype(o_ref.dtype)


def _vmem_estimate(tm, th, dim_p, x_bytes, w_bytes):
    """Rough double-buffered working-set size for tile selection."""
    return (
        2 * tm * dim_p * x_bytes       # x input (double-buffered)
        + 2 * th * dim_p * w_bytes     # w1 tile
        + 2 * dim_p * th * w_bytes     # w2 tile
        + 2 * 8 * th * w_bytes         # b1 (sublane-padded)
        + 2 * 8 * dim_p * w_bytes      # b2
        + 2 * tm * dim_p * x_bytes     # output tile
        + tm * dim_p * 4               # f32 accumulator scratch
    )


def feed_forward(
    x,
    w1,
    b1,
    w2,
    b2,
    *,
    block_rows=256,
    block_hidden=512,
    matmul_dtype=None,
    vmem_limit_bytes=64 * 1024 * 1024,
):
    """FeedForward forward pass.

    x : [..., dim]
    w1: [hidden, dim]  b1: [hidden]      (first nn.Linear, torch layout)
    w2: [dim, hidden]  b2: [dim]         (second nn.Linear, torch layout)
    matmul_dtype: dtype fed to the MXU (e.g. jnp.bfloat16 on v6e/v7x); defaults
                  to x.dtype. Accumulation and GELU stay in f32 regardless.
    """
    orig_shape = x.shape
    dim = orig_shape[-1]
    hidden = w1.shape[0]
    assert w1.shape == (hidden, dim) and w2.shape == (dim, hidden)
    assert b1.shape == (hidden,) and b2.shape == (dim,)

    x2d = x.reshape(-1, dim)
    n = x2d.shape[0]
    mxu_dtype = x.dtype if matmul_dtype is None else matmul_dtype
    x_bytes = jnp.dtype(x.dtype).itemsize
    w_bytes = jnp.dtype(w1.dtype).itemsize

    # ---- tile selection: (8,128)/MXU aligned, VMEM-budget aware ----
    dim_p = _round_up(dim, 128)                               # lane-dense output
    tm = block_rows if n >= block_rows else _round_up(n, 8)
    hidden_128 = _round_up(hidden, 128)

    budget = int(vmem_limit_bytes * 0.75)   # leave headroom under the scoped limit

    # Prefer collapsing the reduction to a single k-step when it fits the budget.
    if _vmem_estimate(tm, hidden_128, dim_p, x_bytes, w_bytes) <= budget:
        th = hidden_128
    else:
        th = block_hidden if hidden >= block_hidden else hidden_128
    # Shrink hidden tile, then row tile, until the working set fits.
    while th > 128 and _vmem_estimate(tm, th, dim_p, x_bytes, w_bytes) > budget:
        th = max(128, _round_up(th // 2, 128))
    while tm > 8 and _vmem_estimate(tm, th, dim_p, x_bytes, w_bytes) > budget:
        tm = max(8, _round_up(tm // 2, 8))

    n_p = _round_up(n, tm)
    hidden_p = _round_up(hidden, th)

    # ---- zero-pad operands in the wrapper (cheaper than per-tile masking) ----
    def _pad2(a, rows, cols):
        if rows or cols:
            return jnp.pad(a, ((0, rows), (0, cols)))
        return a

    xp = _pad2(x2d, n_p - n, dim_p - dim)
    w1p = _pad2(w1, hidden_p - hidden, dim_p - dim)
    w2p = _pad2(w2, dim_p - dim, hidden_p - hidden)
    b1p = _pad2(b1.reshape(1, hidden), 0, hidden_p - hidden)
    b2p = _pad2(b2.reshape(1, dim), 0, dim_p - dim)

    grid = (n_p // tm, hidden_p // th)
    kernel = functools.partial(_ffn_kernel, mxu_dtype=mxu_dtype)

    out = pl.pallas_call(
        kernel,
        out_shape=jax.ShapeDtypeStruct((n_p, dim_p), x.dtype),
        grid_spec=pltpu.PrefetchScalarGridSpec(
            num_scalar_prefetch=0,
            grid=grid,
            in_specs=[
                pl.BlockSpec((tm, dim_p), lambda i, k: (i, 0)),   # x: resident across k
                pl.BlockSpec((th, dim_p), lambda i, k: (k, 0)),   # w1 tile (torch layout)
                pl.BlockSpec((1, th), lambda i, k: (0, k)),       # b1 slice
                pl.BlockSpec((dim_p, th), lambda i, k: (0, k)),   # w2 tile (torch layout)
                pl.BlockSpec((1, dim_p), lambda i, k: (0, 0)),    # b2 (finalize only)
            ],
            out_specs=pl.BlockSpec((tm, dim_p), lambda i, k: (i, 0)),
            scratch_shapes=[pltpu.VMEM((tm, dim_p), jnp.float32)],
        ),
        compiler_params=pltpu.CompilerParams(
            dimension_semantics=("parallel", "arbitrary"),
            vmem_limit_bytes=vmem_limit_bytes,
        ),
    )(xp, w1p, b1p, w2p, b2p)

    return out[:n, :dim].reshape(orig_shape)


def init_params(key, dim, hidden_dim, dtype=jnp.float32):
    """Deterministic nn.Linear-style init: U(-1/sqrt(fan_in), 1/sqrt(fan_in))."""
    k1, k2, k3, k4 = jax.random.split(key, 4)
    bound1 = 1.0 / (dim ** 0.5)
    bound2 = 1.0 / (hidden_dim ** 0.5)
    w1 = jax.random.uniform(k1, (hidden_dim, dim), dtype, -bound1, bound1)
    b1 = jax.random.uniform(k2, (hidden_dim,), dtype, -bound1, bound1)
    w2 = jax.random.uniform(k3, (dim, hidden_dim), dtype, -bound2, bound2)
    b2 = jax.random.uniform(k4, (dim,), dtype, -bound2, bound2)
    return w1, b1, w2, b2


def _reference(x, w1, b1, w2, b2):
    h = x @ w1.T + b1
    h = 0.5 * h * (1.0 + lax.erf(h / jnp.sqrt(2.0)))
    return h @ w2.T + b2


if __name__ == "__main__":
    # TODO(synk): Dropout with p>0 (training mode) not implemented; module default p=0.0.
    # Small shapes chosen to exercise: ragged row count (n=18), dim padding (96->128),
    # and both a multi-step and a single-step hidden reduction.
    batch, seq, dim, hidden_dim = 2, 9, 96, 256

    key = jax.random.PRNGKey(0)
    kx, kp = jax.random.split(key)
    x = jax.random.normal(kx, (batch, seq, dim), dtype=jnp.float32)
    w1, b1, w2, b2 = init_params(kp, dim, hidden_dim)

    ref = _reference(x, w1, b1, w2, b2)

    # (a) forced small tiles -> grid (3, 2): exercises accumulator init/finalize,
    #     row tiling, and the multi-step hidden reduction path.
    out_tiled = feed_forward(
        x, w1, b1, w2, b2, block_rows=8, block_hidden=128,
        vmem_limit_bytes=2 * 1024 * 1024,
    )
    jax.block_until_ready(out_tiled)
    assert out_tiled.shape == x.shape
    assert jnp.allclose(out_tiled, ref, atol=1e-4, rtol=1e-4), "tiled kernel mismatch"

    # (b) default config: adaptive hidden tile covers the whole hidden -> single
    #     k-step, single row tile at these sizes.
    out_default = feed_forward(x, w1, b1, w2, b2)
    jax.block_until_ready(out_default)
    assert jnp.allclose(out_default, ref, atol=1e-4, rtol=1e-4), "default kernel mismatch"

    # (c) bf16 MXU path (f32 accumulation / GELU) -- loose tolerance sanity check.
    out_bf16 = feed_forward(x, w1, b1, w2, b2, matmul_dtype=jnp.bfloat16)
    jax.block_until_ready(out_bf16)
    assert jnp.all(jnp.isfinite(out_bf16))
    assert jnp.allclose(out_bf16, ref, atol=0.5, rtol=0.5), "bf16 kernel mismatch"

    print("KERNEL_OK")
</pallas_src>

<mosaic_0001>
module attributes {stable_mosaic.version = 11 : i64} {
  func.func @_ffn_kernel(%arg0: i32, %arg1: i32, %arg2: memref<8x128xf32, #tpu.memory_space<vmem>>, %arg3: memref<256x128xf32, #tpu.memory_space<vmem>>, %arg4: memref<1x256xf32, #tpu.memory_space<vmem>>, %arg5: memref<128x256xf32, #tpu.memory_space<vmem>>, %arg6: memref<1x128xf32, #tpu.memory_space<vmem>>, %arg7: memref<8x128xf32, #tpu.memory_space<vmem>>, %arg8: memref<8x128xf32, #tpu.memory_space<vmem>>) attributes {dimension_semantics = [#tpu.dimension_semantics<parallel>, #tpu.dimension_semantics<arbitrary>], iteration_bounds = array<i64: 3, 1>, scalar_prefetch = 0 : i64, scratch_operands = 1 : i64, tpu.core_type = #tpu.core_type<tc>, window_params = [{transform_indices = @transform_0, window_bounds = array<i64: 8, 128>}, {transform_indices = @transform_1, window_bounds = array<i64: 256, 128>}, {transform_indices = @transform_2, window_bounds = array<i64: 1, 256>}, {transform_indices = @transform_3, window_bounds = array<i64: 128, 256>}, {pipeline_mode = #tpu.pipeline_mode<synchronous>, transform_indices = @transform_4, window_bounds = array<i64: 1, 128>}, {transform_indices = @transform_5, window_bounds = array<i64: 8, 128>}]} {
    %c0_i32 = arith.constant 0 : i32
    %0 = arith.cmpi eq, %arg1, %c0_i32 : i32
    %1 = arith.extui %0 : i1 to i32
    %c0_i32_0 = arith.constant 0 : i32
    %2 = arith.cmpi ne, %1, %c0_i32_0 : i32
    scf.if %2 {
      %cst_18 = arith.constant 0.000000e+00 : f32
      %25 = vector.broadcast %cst_18 : f32 to vector<8x128xf32>
      %c0_19 = arith.constant 0 : index
      %c0_20 = arith.constant 0 : index
      %26 = vector.load %arg8[%c0_19, %c0_20] : memref<8x128xf32, #tpu.memory_space<vmem>>, vector<8x128xf32>
      tpu.vector_store %arg8[%c0_19, %c0_20], %25 {strides = array<i32>} : memref<8x128xf32, #tpu.memory_space<vmem>>, vector<8x128xf32>,
    } else {
    }
    %c0 = arith.constant 0 : index
    %c0_1 = arith.constant 0 : index
    %3 = vector.load %arg2[%c0, %c0_1] : memref<8x128xf32, #tpu.memory_space<vmem>>, vector<8x128xf32>
    %c0_2 = arith.constant 0 : index
    %c0_3 = arith.constant 0 : index
    %4 = vector.load %arg3[%c0_2, %c0_3] : memref<256x128xf32, #tpu.memory_space<vmem>>, vector<256x128xf32>
    %cst = arith.constant dense<0.000000e+00> : vector<8x256xf32>
    %5 = tpu.matmul %3, %4, %cst {dimension_numbers = #tpu.dot_dimension_numbers<[1], [1], [0], [0], [0, 0, 1, 0], [], []>} : vector<8x128xf32>, vector<256x128xf32>, vector<8x256xf32> -> vector<8x256xf32>
    %c0_4 = arith.constant 0 : index
    %c0_5 = arith.constant 0 : index
    %6 = vector.load %arg4[%c0_4, %c0_5] : memref<1x256xf32, #tpu.memory_space<vmem>>, vector<1x256xf32>
    %7 = vector.broadcast %6 : vector<1x256xf32> to vector<8x256xf32>
    %8 = arith.addf %5, %7 : vector<8x256xf32>
    %cst_6 = arith.constant 5.000000e-01 : f32
    %9 = vector.broadcast %cst_6 : f32 to vector<8x256xf32>
    %10 = arith.mulf %9, %8 : vector<8x256xf32>
    %cst_7 = arith.constant 0.707106769 : f32
    %11 = vector.broadcast %cst_7 : f32 to vector<8x256xf32>
    %12 = arith.mulf %8, %11 : vector<8x256xf32>
    %13 = math.erf %12 : vector<8x256xf32>
    %cst_8 = arith.constant 1.000000e+00 : f32
    %14 = vector.broadcast %cst_8 : f32 to vector<8x256xf32>
    %15 = arith.addf %14, %13 : vector<8x256xf32>
    %16 = arith.mulf %10, %15 : vector<8x256xf32>
    %c0_9 = arith.constant 0 : index
    %c0_10 = arith.constant 0 : index
    %17 = vector.load %arg8[%c0_9, %c0_10] : memref<8x128xf32, #tpu.memory_space<vmem>>, vector<8x128xf32>
    %c0_11 = arith.constant 0 : index
    %c0_12 = arith.constant 0 : index
    %18 = vector.load %arg5[%c0_11, %c0_12] : memref<128x256xf32, #tpu.memory_space<vmem>>, vector<128x256xf32>
    %cst_13 = arith.constant dense<0.000000e+00> : vector<8x128xf32>
    %19 = tpu.matmul %16, %18, %cst_13 {dimension_numbers = #tpu.dot_dimension_numbers<[1], [1], [0], [0], [0, 0, 1, 0], [], []>} : vector<8x256xf32>, vector<128x256xf32>, vector<8x128xf32> -> vector<8x128xf32>
    %20 = arith.addf %17, %19 : vector<8x128xf32>
    %c0_14 = arith.constant 0 : index
    %c0_15 = arith.constant 0 : index
    %21 = vector.load %arg8[%c0_14, %c0_15] : memref<8x128xf32, #tpu.memory_space<vmem>>, vector<8x128xf32>
    tpu.vector_store %arg8[%c0_14, %c0_15], %20 {strides = array<i32>} : memref<8x128xf32, #tpu.memory_space<vmem>>, vector<8x128xf32>,
    %c0_i32_16 = arith.constant 0 : i32
    %22 = arith.cmpi eq, %arg1, %c0_i32_16 : i32
    %23 = arith.extui %22 : i1 to i32
    %c0_i32_17 = arith.constant 0 : i32
    %24 = arith.cmpi ne, %23, %c0_i32_17 : i32
    scf.if %24 {
      %c0_18 = arith.constant 0 : index
      %c0_19 = arith.constant 0 : index
      %25 = vector.load %arg8[%c0_18, %c0_19] : memref<8x128xf32, #tpu.memory_space<vmem>>, vector<8x128xf32>
      %c0_20 = arith.constant 0 : index
      %c0_21 = arith.constant 0 : index
      %26 = vector.load %arg6[%c0_20, %c0_21] : memref<1x128xf32, #tpu.memory_space<vmem>>, vector<1x128xf32>
      %27 = vector.broadcast %26 : vector<1x128xf32> to vector<8x128xf32>
      %28 = arith.addf %25, %27 : vector<8x128xf32>
      %c0_22 = arith.constant 0 : index
      %c0_23 = arith.constant 0 : index
      %29 = vector.load %arg7[%c0_22, %c0_23] : memref<8x128xf32, #tpu.memory_space<vmem>>, vector<8x128xf32>
      tpu.vector_store %arg7[%c0_22, %c0_23], %28 {strides = array<i32>} : memref<8x128xf32, #tpu.memory_space<vmem>>, vector<8x128xf32>,
    } else {
    }
    return
  }
  func.func @transform_0(%arg0: i32, %arg1: i32) -> (i32, i32) {
    %c0_i32 = arith.constant 0 : i32
    %c0_i32_0 = arith.constant 0 : i32
    return %arg0, %c0_i32 : i32, i32
  }
  func.func @transform_1(%arg0: i32, %arg1: i32) -> (i32, i32) {
    %c0_i32 = arith.constant 0 : i32
    %c0_i32_0 = arith.constant 0 : i32
    return %arg1, %c0_i32 : i32, i32
  }
  func.func @transform_2(%arg0: i32, %arg1: i32) -> (i32, i32) {
    %c0_i32 = arith.constant 0 : i32
    %c0_i32_0 = arith.constant 0 : i32
    return %c0_i32, %arg1 : i32, i32
  }
  func.func @transform_3(%arg0: i32, %arg1: i32) -> (i32, i32) {
    %c0_i32 = arith.constant 0 : i32
    %c0_i32_0 = arith.constant 0 : i32
    return %c0_i32, %arg1 : i32, i32
  }
  func.func @transform_4(%arg0: i32, %arg1: i32) -> (i32, i32) {
    %c0_i32 = arith.constant 0 : i32
    %c0_i32_0 = arith.constant 0 : i32
    %c0_i32_1 = arith.constant 0 : i32
    return %c0_i32, %c0_i32_0 : i32, i32
  }
  func.func @transform_5(%arg0: i32, %arg1: i32) -> (i32, i32) {
    %c0_i32 = arith.constant 0 : i32
    %c0_i32_0 = arith.constant 0 : i32
    return %arg0, %c0_i32 : i32, i32
  }
}

</mosaic_0001>

<bundles_post_ra>
// kernel: tpu_custom_call.1
= control target key start
LH: loop header
LB: loop body
LE: loop exit
PB: predicated region body
PF: predicated region fallthrough
CT: control target
= control target key end

     0   :  { %10 = vsyncpa [#allocation4], 0  ;;  %s1279_s0 = inlined_call_operand.hbm [shape: f32[24,128], index: 0, kind: input, shape index: {}]   ;;  %s1280_s1 = inlined_call_operand.hbm [shape: f32[256,128], index: 1, kind: input, shape index: {}]   ;;  %s1281_s2 = inlined_call_operand.hbm [shape: f32[1,256], index: 2, kind: input, shape index: {}]   ;;  %s1282_s3 = inlined_call_operand.hbm [shape: f32[128,256], index: 3, kind: input, shape index: {}]   ;;  %s1283_s4 = inlined_call_operand.vmem [shape: f32[1,128], index: 4, kind: input, shape index: {}]   ;;  %s1284_s5 = inlined_call_operand.hbm [shape: f32[24,128], index: 5, kind: output, shape index: {}]  }
   0x1   :  { %12 = vsyncpa [#allocation4 + $0x1], 0 }
   0x2   :  { %13 = vsyncpa [#allocation7], 0 }
   0x3   :  { %14 = vsyncpa [#allocation10], 0 }
   0x4   :  { %15 = vsyncpa [#allocation5], 0 }
   0x5   :  { %17 = vsyncpa [#allocation5 + $0x1], 0  ;;  %s1086_s18 = smov 0   ;;  %s1088_s19 = smov 0  }
   0x6   :  { %s1090_s20 = smov 0   ;;  %s1092_s21 = smov 0  }
   0x7   :  { %s1094_s22 = smov 0   ;;  %s1096_s23 = smov 0  }
   0x8 LB: > { %s714_s24 = sadd.s32 4294967295, %s1047_s23   ;;  %p716_p0 = scmp.ge.s32.totalorder %s1047_s23, 1  ;;  %s1047_s23 = sphi %s1096_s23, %s23_s23   ;;  %s1043_s22 = sphi %s1094_s22, %s1296_s22   ;;  %s1039_s21 = sphi %s1092_s21, %s1295_s21   ;;  %s1035_s20 = sphi %s1090_s20, %s1294_s20   ;;  %s1031_s19 = sphi %s1088_s19, %s1293_s19   ;;  %s1027_s18 = sphi %s1086_s18, %s1292_s18  }
   0x9   : > { %p1120_p1 = scmp.eq.s32.totalorder %s714_s24, 0  ;;  %p191_p2 = scmp.lt.s32.totalorder %s1047_s23, 4 }
   0xa   : > { %s205_s28 = sshll.u32 %s1280_s1, 4  ;;  %s1049_s30 = smov [#allocation6]   ;;  %s206_s28 = int_to_ptr.hbm [resolvable:$true] %s205_s28 }
   0xb   : > { %p1128_p3 = pnand %p716_p0, %p191_p2  ;;  %s207_s6 = sshll.u32 %s1049_s30, 4  ;;  %s208_s6 = int_to_ptr.vmem [resolvable:$true] %s207_s6 }
   0xc   : > { %s222_s10 = sshll.u32 %s1281_s2, 4  ;;  %s1050_s11 = smov 128   ;;  %s223_s10 = int_to_ptr.hbm [resolvable:$true] %s222_s10 }
   0xd   : > { %p751_p4 = pneg %p1128_p3  ;;  %s1051_s12 = smov 8  }
   0xe   : > { %s1052_s13 = smov [#allocation8]   ;;  %s236_s17 = sshll.u32 %s1282_s3, 4  ;;  %s237_s17 = int_to_ptr.hbm [resolvable:$true] %s236_s17 }
   0xf   : > { %p1136_p5 = pnand %p751_p4, %p1120_p1  ;;  %s224_s14 = sshll.u32 %s1052_s13, 4  ;;  %s225_s14 = int_to_ptr.vmem [resolvable:$true] %s224_s14 }
  0x10   : > { %s1053_s26 = smov [#allocation9]   ;;  %s1055_s30 = smov 16  }
  0x11   : > { %754 = dma.hbm_to_vmem [thread:$0]  (!%p1136_p5), %s206_s28, 4096, %s208_s6, [#allocation7], %s1050_s11, %s1050_s11, %s1051_s12  }
  0x12   : > { %757 = dma.hbm_to_vmem [thread:$0]  (!%p1136_p5), %s223_s10, 32, %s225_s14, [#allocation7]  }
  0x13   : > { %s238_s27 = sshll.u32 %s1053_s26, 4  ;;  %s1054_s28 = smov 256   ;;  %s239_s27 = int_to_ptr.vmem [resolvable:$true] %s238_s27 }
  0x14   : > { %760 = dma.hbm_to_vmem [thread:$0]  (!%p1136_p5), %s237_s17, 4096, %s239_s27, [#allocation10], %s1054_s28, %s1054_s28, %s1055_s30  }
  0x15   : > { %s715_s6 = sadd.s32 4294967294, %s1047_s23   ;;  %s35_s8 = sadd.s32 1, %s1043_s22 }
  0x16   : > { %s42_s9 = sadd.s32 1, %s1035_s20  ;;  %p37_p6 = scmp.ge.s32.totalorder %s35_s8, 3 }
  0x17   : > { %p49_p7 = scmp.ne.s32.totalorder %s1035_s20, %s1031_s19  ;;  %p50_p8 = scmp.eq.s32.totalorder %s1047_s23, 0 }
  0x18   : > { %p55_p9 = scmp.ne.s32.totalorder %s1031_s19, %s1027_s18  ;;  %s1298_s8 = smov (%p37_p6, %s35_s8), 0 }
  0x19   : > { %p1162_p10 = por %p50_p8, %p49_p7  ;;  %s39_s11 = ssub.s32 %s1043_s22, %s1298_s8 }
  0x1a   : > { %p1168_p11 = por %p1120_p1, %p55_p9  ;;  %p178_p12 = scmp.eq.s32.totalorder %s714_s24, 2 }
  0x1b   : > { %p40_p13 = scmp.eq.s32.totalorder %s39_s11, 0  ;;  %p184_p0 = scmp.eq.s32.totalorder %s715_s6, 2 }
  0x1c   : > { %p1176_p2 = por %p178_p12, %p49_p7  ;;  %p772_p4 = scmp.lt.s32.totalorder %s1047_s23, 3 }
  0x1d   : > { %s1182_s13 = scalar_select %p40_p13, %s1035_s20, %s42_s9  }
  0x1e   : > { %p1184_p5 = por %p184_p0, %p55_p9  ;;  %s255_s15 = sand.u32 1, %s1035_s20  }
  0x1f   : > { %s721_s16 = sshll.u32 %s255_s15, 3  ;;  %s722_s17 = sshll.u32 %s1043_s22, 3 }
  0x20   : > { %s263_s24 = scalar_lea.hbm %s1279_s0, %s722_s17  ;;  %s259_s28 = scalar_lea.vmem [#allocation3], %s721_s16 }
  0x21   : > { %s267_s30 = sshll.u32 %s259_s28, 4  ;;  %s265_s6 = sshll.u32 %s263_s24, 4  ;;  %s268_s30 = int_to_ptr.vmem [resolvable:$true] %s267_s30  ;;  %s266_s6 = int_to_ptr.hbm [resolvable:$true] %s265_s6 }
  0x22   : > { %p762_p6 = pnand %p772_p4, %p1162_p10  ;;  %s256_s9 = scalar_lea.sflag [#allocation4], %s255_s15 }
  0x23   : > { %276 = sbr.rel (%p1128_p3) target bundleno = 428 (0x1ac), region = 40  ;;  %s1198_s11 = sand.u32 (!%p1128_p3), 1, %s1031_s19  }
  0x24   : > { %764 = dma.hbm_to_vmem [thread:$0]  (!%p762_p6), %s266_s6, 128, %s268_s30, %s256_s9  }
  0x25   : > { %s724_s17 = sshll.u32 (!%p1128_p3), %s1198_s11, 3  ;;  %s279_s16 = scalar_lea.sflag (!%p1128_p3), [#allocation4], %s1198_s11 }
  0x26   : > { %s1204_s26 = scalar_lea.vmem (!%p1128_p3), [#allocation3], %s724_s17 }
  0x28   : > { %1010 = dma.done.wait (%p1168_p11), %s279_s16, 128  }
  0x29   : > { %1012 = vsyncadd (%p1168_p11), %s279_s16, 4294967168 }
  0x2a   : > { %1014 = dma.done.wait (%p1120_p1), [#allocation7], 4128  }
  0x2b   : > { %1016 = vsyncadd (%p1120_p1), [#allocation7], 4294963168 }
  0x2c   : > { %1018 = dma.done.wait (%p1120_p1), [#allocation10], 4096  }
  0x2d   : > { %1020 = vsyncadd (%p1120_p1), [#allocation10], 4294963200  ;;  %v349_v0 = vld [vmem:[#allocation6 + $0x78] sm:$0xff]  ;;  %v348_v2 = vld [vmem:[#allocation6 + $0x70] sm:$0xff]  ;;  %s732_s25 = sshll.u32 %s1039_s21, 3  ;;  %s324_s24 = scalar_lea.vmem [#allocation11], %s724_s17 }
  0x2e   : > { %v365_v1 = vld [vmem:[#allocation6 + $0xf8] sm:$0xff]  ;;  %372 = vmatpush.xpose.msra.mxu0 %v349_v0  ;;  %v364_v3 = vld [vmem:[#allocation6 + $0xf0] sm:$0xff]  ;;  %v347_v4 = vld [vmem:[#allocation6 + $0x68] sm:$0xff]  ;;  %s596_s7 = scalar_lea.hbm %s1284_s5, %s732_s25  ;;  %s598_s28 = sshll.u32 %s324_s24, 4  ;;  %s599_s28 = int_to_ptr.vmem [resolvable:$true] %s598_s28 }
  0x2f   : > { %392 = vmatpush.xpose.msra.mxu1 %v365_v1  ;;  %v363_v5 = vld [vmem:[#allocation6 + $0xe8] sm:$0xff]  ;;  %v346_v6 = vld [vmem:[#allocation6 + $0x60] sm:$0xff]  ;;  %v345_v8 = vld [vmem:[#allocation6 + $0x58] sm:$0xff]  ;;  %s600_s30 = sshll.u32 %s596_s7, 4  ;;  %s586_s21 = scalar_lea.sflag [#allocation5], %s1198_s11  ;;  %s601_s30 = int_to_ptr.hbm [resolvable:$true] %s600_s30 }
  0x30   : > { %v362_v7 = vld [vmem:[#allocation6 + $0xe0] sm:$0xff]  ;;  %v361_v9 = vld [vmem:[#allocation6 + $0xd8] sm:$0xff]  ;;  %v344_v10 = vld [vmem:[#allocation6 + $0x50] sm:$0xff]  ;;  %s971_s6 = sshra.s32 %s601_s30, 4  ;;  %s977_s25 = scalar_lea.hbm %s1284_s5, 24  ;;  %s972_s6 = int_to_ptr.hbm [resolvable:$true] %s971_s6 }
  0x31   : > { %v360_v11 = vld [vmem:[#allocation6 + $0xd0] sm:$0xff]  ;;  %v343_v12 = vld [vmem:[#allocation6 + $0x48] sm:$0xff]  ;;  %v342_v14 = vld [vmem:[#allocation6 + $0x40] sm:$0xff]  ;;  %s973_s9 = scalar_lea.hbm %s972_s6, 8  ;;  %p978_p8 = scmp.lt.s32.totalorder %s972_s6, %s1284_s5 }
  0x32   : > { %373 = vmatpush.xpose.msra.mxu0 %v348_v2  ;;  %v359_v13 = vld [vmem:[#allocation6 + $0xc8] sm:$0xff]  ;;  %v358_v15 = vld [vmem:[#allocation6 + $0xc0] sm:$0xff]  ;;  %v341_v16 = vld [vmem:[#allocation6 + $0x38] sm:$0xff]  ;;  %p974_p1 = scmp.ne.s32.totalorder %s972_s6, %s973_s9  ;;  %p979_p9 = scmp.lt.s32.totalorder %s977_s25, %s973_s9 }
  0x33   : > { %393 = vmatpush.xpose.msra.mxu1 %v364_v3  ;;  %v357_v17 = vld [vmem:[#allocation6 + $0xb8] sm:$0xff]  ;;  %v340_v20 = vld [vmem:[#allocation6 + $0x30] sm:$0xff]  ;;  %v529_v22 = vld [vmem:[#allocation9 + $0xe0] sm:$0xff] }
  0x34   : > { %v531_v18 = vld [vmem:[#allocation9 + $0xf0] sm:$0xff]  ;;  %v532_v19 = vld [vmem:[#allocation9 + $0xf8] sm:$0xff]  ;;  %v530_v23 = vld [vmem:[#allocation9 + $0xe8] sm:$0xff]  ;;  %p975_p3 = pnand %p974_p1, %p1176_p2  ;;  %p980_p10 = por %p979_p9, %p978_p8 }
  0x35   : > { %v356_v21 = vld [vmem:[#allocation6 + $0xb0] sm:$0xff]  ;;  %533 = vmatpush.xpose.msra.mxu2 %v531_v18  ;;  %553 = vmatpush.xpose.msra.mxu3 %v532_v19  ;;  %v339_v24 = vld [vmem:[#allocation6 + $0x28] sm:$0xff]  ;;  %v528_v27 = vld [vmem:[#allocation9 + $0xd8] sm:$0xff] }
  0x36   : > { %374 = vmatpush.xpose.msra.mxu0 %v347_v4  ;;  %v355_v25 = vld [vmem:[#allocation6 + $0xa8] sm:$0xff]  ;;  %v527_v26 = vld [vmem:[#allocation9 + $0xd0] sm:$0xff]  ;;  %v338_v28 = vld [vmem:[#allocation6 + $0x20] sm:$0xff]  ;;  %p976_p7 = pneg %p975_p3 }
  0x37   : > { %394 = vmatpush.xpose.msra.mxu1 %v363_v5  ;;  %v354_v29 = vld [vmem:[#allocation6 + $0xa0] sm:$0xff]  ;;  %v337_v30 = vld [vmem:[#allocation6 + $0x18] sm:$0xff]  ;;  %v336_v32 = vld [vmem:[#allocation6 + $0x10] sm:$0xff] }
  0x38   : > { %v353_v31 = vld [vmem:[#allocation6 + $0x98] sm:$0xff]  ;;  %v352_v33 = vld [vmem:[#allocation6 + $0x90] sm:$0xff]  ;;  %v335_v34 = vld [vmem:[#allocation6 + $0x8] sm:$0xff]  ;;  %p981_p11 = pnand %p980_p10, %p976_p7 }
  0x39   : > { %534 = vmatpush.xpose.msra.mxu2 %v529_v22  ;;  %554 = vmatpush.xpose.msra.mxu3 %v530_v23  ;;  %v351_v35 = vld [vmem:[#allocation6 + $0x88] sm:$0xff]  ;;  %v334_v36 = vld [vmem:[#allocation6] sm:$0xff]  ;;  %v333_v38 = vld [vmem:[%s1204_s26] sm:$0xff] }
  0x3a   : > { %375 = vmatpush.xpose.msra.mxu0 %v346_v6  ;;  %v350_v37 = vld [vmem:[#allocation6 + $0x80] sm:$0xff]  ;;  %v526_v40 = vld [vmem:[#allocation9 + $0xc8] sm:$0xff]  ;;  %v523_v41 = vld [vmem:[#allocation9 + $0xb0] sm:$0xff] }
  0x3b   : > { %395 = vmatpush.xpose.msra.mxu1 %v362_v7  ;;  %v525_v39 = vld [vmem:[#allocation9 + $0xc0] sm:$0xff]  ;;  %v524_v42 = vld [vmem:[#allocation9 + $0xb8] sm:$0xff]  ;;  %v522_v44 = vld [vmem:[#allocation9 + $0xa8] sm:$0xff] }
  0x3c   : > { %v521_v43 = vld [vmem:[#allocation9 + $0xa0] sm:$0xff]  ;;  %v519_v45 = vld [vmem:[#allocation9 + $0x90] sm:$0xff]  ;;  %v520_v46 = vld [vmem:[#allocation9 + $0x98] sm:$0xff] }
  0x3d   : > { %535 = vmatpush.xpose.msra.mxu2 %v527_v26  ;;  %555 = vmatpush.xpose.msra.mxu3 %v528_v27  ;;  %v517_v47 = vld [vmem:[#allocation9 + $0x80] sm:$0xff]  ;;  %v518_v48 = vld [vmem:[#allocation9 + $0x88] sm:$0xff]  ;;  %v515_v49 = vld [vmem:[#allocation9 + $0x70] sm:$0xff] }
  0x3e   : > { %376 = vmatpush.xpose.msra.mxu0 %v345_v8  ;;  %v516_v50 = vld [vmem:[#allocation9 + $0x78] sm:$0xff]  ;;  %v513_v52 = vld [vmem:[#allocation9 + $0x60] sm:$0xff]  ;;  %v514_v53 = vld [vmem:[#allocation9 + $0x68] sm:$0xff] }
  0x3f   : > { %396 = vmatpush.xpose.msra.mxu1 %v361_v9  ;;  %v366_v51 = vld [vmem:[#allocation8] sm:$0x3]  ;;  %v511_v56 = vld [vmem:[#allocation9 + $0x50] sm:$0xff]  ;;  %v509_v60 = vld [vmem:[#allocation9 + $0x40] sm:$0xff] }
  0x40   : > { %v368_v54 = vperm.slane %v366_v51, 0  ;;  %v369_v55 = vperm.slane %v366_v51, 1  ;;  %v512_v57 = vld [vmem:[#allocation9 + $0x58] sm:$0xff]  ;;  %v510_v61 = vld [vmem:[#allocation9 + $0x48] sm:$0xff]  ;;  %v507_v2 = vld [vmem:[#allocation9 + $0x30] sm:$0xff] }
  0x41   : > { %536 = vmatpush.xpose.msra.mxu2 %v525_v39  ;;  %556 = vmatpush.xpose.msra.mxu3 %v526_v40  ;;  %v508_v3 = vld [vmem:[#allocation9 + $0x38] sm:$0xff]  ;;  %v505_v8 = vld [vmem:[#allocation9 + $0x20] sm:$0xff]  ;;  %v506_v9 = vld [vmem:[#allocation9 + $0x28] sm:$0xff] }
  0x42   : > { %377 = vmatpush.xpose.msra.mxu0 %v344_v10  ;;  %v504_v18 = vld [vmem:[#allocation9 + $0x18] sm:$0xff]  ;;  %v501_v26 = vld [vmem:[#allocation9] sm:$0xff]  ;;  %v502_v27 = vld [vmem:[#allocation9 + $0x8] sm:$0xff] }
  0x43   : > { %397 = vmatpush.xpose.msra.mxu1 %v360_v11 }
  0x45   : > { %537 = vmatpush.xpose.msra.mxu2 %v523_v41  ;;  %557 = vmatpush.xpose.msra.mxu3 %v524_v42 }
  0x46   : > { %378 = vmatpush.xpose.msra.mxu0 %v343_v12 }
  0x47   : > { %398 = vmatpush.xpose.msra.mxu1 %v359_v13 }
  0x49   : > { %538 = vmatpush.xpose.msra.mxu2 %v521_v43  ;;  %558 = vmatpush.xpose.msra.mxu3 %v522_v44 }
  0x4a   : > { %379 = vmatpush.xpose.msra.mxu0 %v342_v14 }
  0x4b   : > { %399 = vmatpush.xpose.msra.mxu1 %v358_v15 }
  0x4d   : > { %539 = vmatpush.xpose.msra.mxu2 %v519_v45  ;;  %559 = vmatpush.xpose.msra.mxu3 %v520_v46 }
  0x4e   : > { %380 = vmatpush.xpose.msra.mxu0 %v341_v16 }
  0x4f   : > { %400 = vmatpush.xpose.msra.mxu1 %v357_v17  ;;  %v503_v17 = vld [vmem:[#allocation9 + $0x10] sm:$0xff] }
  0x51   : > { %540 = vmatpush.xpose.msra.mxu2 %v517_v47  ;;  %560 = vmatpush.xpose.msra.mxu3 %v518_v48 }
  0x52   : > { %381 = vmatpush.xpose.msra.mxu0 %v340_v20 }
  0x53   : > { %401 = vmatpush.xpose.msra.mxu1 %v356_v21 }
  0x55   : > { %541 = vmatpush.xpose.msra.mxu2 %v515_v49  ;;  %561 = vmatpush.xpose.msra.mxu3 %v516_v50 }
  0x56   : > { %382 = vmatpush.xpose.msra.mxu0 %v339_v24 }
  0x57   : > { %402 = vmatpush.xpose.msra.mxu1 %v355_v25 }
  0x59   : > { %542 = vmatpush.xpose.msra.mxu2 %v513_v52  ;;  %562 = vmatpush.xpose.msra.mxu3 %v514_v53 }
  0x5a   : > { %383 = vmatpush.xpose.msra.mxu0 %v338_v28 }
  0x5b   : > { %403 = vmatpush.xpose.msra.mxu1 %v354_v29 }
  0x5d   : > { %543 = vmatpush.xpose.msra.mxu2 %v511_v56  ;;  %563 = vmatpush.xpose.msra.mxu3 %v512_v57 }
  0x5e   : > { %384 = vmatpush.xpose.msra.mxu0 %v337_v30 }
  0x5f   : > { %404 = vmatpush.xpose.msra.mxu1 %v353_v31 }
  0x61   : > { %544 = vmatpush.xpose.msra.mxu2 %v509_v60  ;;  %564 = vmatpush.xpose.msra.mxu3 %v510_v61 }
  0x62   : > { %385 = vmatpush.xpose.msra.mxu0 %v336_v32 }
  0x63   : > { %405 = vmatpush.xpose.msra.mxu1 %v352_v33 }
  0x65   : > { %545 = vmatpush.xpose.msra.mxu2 %v507_v2  ;;  %565 = vmatpush.xpose.msra.mxu3 %v508_v3 }
  0x66   : > { %386 = vmatpush.xpose.msra.mxu0 %v335_v34 }
  0x67   : > { %406 = vmatpush.xpose.msra.mxu1 %v351_v35 }
  0x69   : > { %546 = vmatpush.xpose.msra.mxu2 %v505_v8  ;;  %566 = vmatpush.xpose.msra.mxu3 %v506_v9 }
  0x6a   : > { %387 = vmatpush.xpose.msra.mxu0 %v334_v36 }
  0x6b   : > { %407 = vmatpush.xpose.msra.mxu1 %v350_v37 }
  0x6d   : > { %388 = vmatmul.f32.vlgmr.msra.gmra.mxu0 %v333_v38  ;;  %547 = vmatpush.xpose.msra.mxu2 %v503_v17 }
  0x6e   : > { %408 = vmatmul.f32.vlgmr.msra.gmra.mxu1 %v333_v38  ;;  %567 = vmatpush.xpose.msra.mxu3 %v504_v18 }
  0x71   : > { %548 = vmatpush.xpose.msra.mxu2 %v501_v26 }
  0x72   : > { %568 = vmatpush.xpose.msra.mxu3 %v502_v27 }
  0xea   : > { %v389_v58 = vpop.f32.mrf.mxu0 }
  0xeb   : > { %v409_v59 = vpop.f32.mrf.mxu1  ;;  %v1219_v62 = vadd.f32 %v389_v58, %v368_v54 }
  0xec   : > { %v1221_v63 = vadd.f32 %v409_v59, %v369_v55 }
  0xed   : > { %v1224_v0 = vmul.f32 0.70710677, %v1219_v62 }
  0xee   : > { %v1227_v1 = vmul.f32 0.70710677, %v1221_v63 }
  0xef   : > { %v416_v4 = vmul.f32 %v1224_v0, %v1224_v0 }
  0xf0   : > { %v456_v5 = vmul.f32 %v1227_v1, %v1227_v1 }
  0xf1   : > { %v417_v6 = vmin.f32 %v416_v4, 16.0 }
  0xf2   : > { %v457_v7 = vmin.f32 %v456_v5, 16.0 }
  0xf3   : > { %v418_v10 = vmul.f32 2.1237322e-06, %v417_v6  ;;  %v429_v12 = vmul.f32 3.8918573e-05, %v417_v6 }
  0xf4   : > { %v458_v11 = vmul.f32 2.1237322e-06, %v457_v7  ;;  %v469_v13 = vmul.f32 3.8918573e-05, %v457_v7 }
  0xf5   : > { %v419_v14 = vadd.f32 0.00028619796, %v418_v10  ;;  %v430_v16 = vadd.f32 0.001143296, %v429_v12 }
  0xf6   : > { %v459_v15 = vadd.f32 0.00028619796, %v458_v11  ;;  %v470_v19 = vadd.f32 0.001143296, %v469_v13 }
  0xf7   : > { %v420_v20 = vmul.f32 %v419_v14, %v417_v6  ;;  %v431_v22 = vmul.f32 %v430_v16, %v417_v6 }
  0xf8   : > { %v460_v21 = vmul.f32 %v459_v15, %v457_v7  ;;  %v471_v23 = vmul.f32 %v470_v19, %v457_v7 }
  0xf9   : > { %v421_v24 = vadd.f32 0.0036580483, %v420_v20  ;;  %v432_v25 = vadd.f32 0.014752088, %v431_v22  ;;  %v412_v20 = vmul.f32 0.5, %v1219_v62 }
  0xfa   : > { %v472_v28 = vadd.f32 0.014752088, %v471_v23  ;;  %v461_v29 = vadd.f32 0.0036580483, %v460_v21  ;;  %v832_v62 = vld [vmem:[%s1283_s4] ss:$0 sm:$0xff] }
  0xfb   : > { %v433_v30 = vmul.f32 %v432_v25, %v417_v6  ;;  %v422_v32 = vmul.f32 %v421_v24, %v417_v6 }
  0xfc   : > { %v473_v31 = vmul.f32 %v472_v28, %v457_v7  ;;  %v462_v35 = vmul.f32 %v461_v29, %v457_v7 }
  0xfd   : > { %v434_v33 = vadd.f32 0.112945676, %v433_v30  ;;  %v423_v38 = vadd.f32 0.05243302, %v422_v32 }
  0xfe   : > { %v474_v34 = vadd.f32 0.112945676, %v473_v31  ;;  %v463_v41 = vadd.f32 0.05243302, %v462_v35 }
  0xff   : > { %v435_v36 = vmul.f32 %v434_v33, %v417_v6  ;;  %v424_v44 = vmul.f32 %v423_v38, %v417_v6 }
 0x100   : > { %v475_v37 = vmul.f32 %v474_v34, %v457_v7  ;;  %v464_v47 = vmul.f32 %v463_v41, %v457_v7 }
 0x101   : > { %v436_v39 = vadd.f32 0.4994258, %v435_v36  ;;  %v425_v48 = vadd.f32 0.18741608, %v424_v44 }
 0x102   : > { %v476_v40 = vadd.f32 0.4994258, %v475_v37  ;;  %v465_v49 = vadd.f32 0.18741608, %v464_v47 }
 0x103   : > { %v437_v42 = vmul.f32 %v436_v39, %v417_v6  ;;  %v426_v51 = vmul.f32 %v425_v48, %v417_v6 }
 0x104   : > { %v477_v43 = vmul.f32 %v476_v40, %v457_v7  ;;  %v466_v54 = vmul.f32 %v465_v49, %v457_v7 }
 0x105   : > { %v438_v45 = vadd.f32 1.0, %v437_v42  ;;  %v427_v57 = vadd.f32 1.1283791, %v426_v51 }
 0x106   : > { %v478_v46 = vadd.f32 1.0, %v477_v43  ;;  %v467_v3 = vadd.f32 1.1283791, %v466_v54 }
 0x107   : > { %833 = vrcp.f32 %v438_v45  ;;  %v450_v58 = vand.u32 2147483648, %v438_v45  ;;  %v448_v61 = vand.u32 2147483647, %v438_v45  ;;  %vm444_vm2 = vweird.f32 %v438_v45 }
 0x108   : > { %835 = vrcp.f32 %v478_v46  ;;  %v490_v2 = vand.u32 2147483648, %v478_v46  ;;  %v488_v5 = vand.u32 2147483647, %v478_v46  ;;  %vm484_vm4 = vweird.f32 %v478_v46 }
 0x109   : > { %v451_v6 = vor.u32 1.1754944e-38, %v450_v58  ;;  %v428_v7 = vmul.f32 %v427_v57, %v1224_v0  ;;  %vm449_vm5 = vcmp.eq.f32.partialorder %v448_v61, 8.507059e+37  ;;  %v468_v12 = vmul.f32 %v467_v3, %v1227_v1 }
 0x10a   : > { %v491_v11 = vor.u32 1.1754944e-38, %v490_v2  ;;  %vm489_vm7 = vcmp.eq.f32.partialorder %v488_v5, 8.507059e+37  ;;  %v413_v0 = vmul.f32 0.5, %v1221_v63 }
 0x10d   : > { %v834_v50 = vpop.eup %833 }
 0x10e   : > { %v836_v52 = vpop.eup %835  ;;  %v440_v53 = vmul.f32 %v834_v50, %v438_v45  ;;  %vm445_vm0 = vweird.f32 %v834_v50 }
 0x10f   : > { %v480_v55 = vmul.f32 %v836_v52, %v478_v46  ;;  %vm485_vm1 = vweird.f32 %v836_v52  ;;  %vm446_vm3 = vmor %vm444_vm2, %vm445_vm0 }
 0x110   : > { %v441_v56 = vsub.f32 1.0, %v440_v53  ;;  %vm486_vm6 = vmor %vm484_vm4, %vm485_vm1 }
 0x111   : > { %v481_v59 = vsub.f32 1.0, %v480_v55 }
 0x112   : > { %v442_v60 = vmul.f32 %v834_v50, %v441_v56 }
 0x113   : > { %v482_v4 = vmul.f32 %v836_v52, %v481_v59 }
 0x114   : > { %v443_v8 = vadd.f32 %v834_v50, %v442_v60 }
 0x115   : > { %v483_v9 = vadd.f32 %v836_v52, %v482_v4 }
 0x116   : > { %v447_v10 = vsel %vm446_vm3, %v834_v50, %v443_v8 }
 0x117   : > { %v452_v13 = vsel %vm449_vm5, %v451_v6, %v447_v10  ;;  %v487_v14 = vsel %vm486_vm6, %v836_v52, %v483_v9 }
 0x118   : > { %v453_v15 = vmul.f32 %v452_v13, %v428_v7  ;;  %v492_v16 = vsel %vm489_vm7, %v491_v11, %v487_v14 }
 0x119   : > { %v493_v17 = vmul.f32 %v492_v16, %v468_v12 }
 0x11a   : > { %v729_v18 = vclamps-f32 %v453_v15, 1.0 }
 0x11b   : > { %v730_v19 = vclamps-f32 %v493_v17, 1.0 }
 0x11c   : > { %v496_v21 = vadd.f32 1.0, %v729_v18 }
 0x11d   : > { %v497_v22 = vadd.f32 1.0, %v730_v19 }
 0x11e   : > { %v498_v23 = vmul.f32 %v496_v21, %v412_v20 }
 0x11f   : > { %v499_v24 = vmul.f32 %v497_v22, %v413_v0 }
 0x120   : > { %549 = vmatmul.f32.vlgmr.msra.gmra.mxu2 %v498_v23 }
 0x121   : > { %569 = vmatmul.f32.vlgmr.msra.gmra.mxu3 %v499_v24 }
 0x1a3   : > { %v550_v1 = vpop.f32.mrf.mxu2 }
 0x1a4   : > { %v570_v25 = vpop.f32.mrf.mxu3 }
 0x1a5   : > { %v571_v63 = vadd.f32 %v570_v25, %v550_v1 }
 0x1a7   : > { %v583_v26 = vadd.f32 %v832_v62, %v571_v63 }
 0x1a9   : > { %584 = vst [vmem:[%s324_s24] sm:$0xff] %v583_v26 }
 0x1aa   : > { %984 = shalt.err (!%p981_p11)
}
 0x1ab   : > { %749 = dma.vmem_to_hbm [thread:$0]  (%p1176_p2), %s599_s28, 128, %s601_s30, %s586_s21  }
 0x1ac PF: > { %p776_p12 = scmp.ge.s32.totalorder %s1047_s23, 2  ;;  %s612_s11 = sand.u32 1, %s1027_s18  }
 0x1ad   : > { %s613_s10 = scalar_lea.sflag [#allocation5], %s612_s11 }
 0x1ae   : > { %p766_p13 = pnand %p776_p12, %p1184_p5 }
 0x1b0   : > { %p767_p0 = pneg %p766_p13 }
 0x1b2   : > { %1022 = dma.done.wait (%p767_p0), %s613_s10, 128  }
 0x1b3   : > { %1024 = vsyncadd (%p767_p0), %s613_s10, 4294967168  ;;  %s23_s23 = sadd.s32 1, %s1047_s23   ;;  %s1292_s18 = smov %s1031_s19 }
 0x1b4   : > { %p20_p4 = scmp.ge.s32.totalorder %s23_s23, 5   ;;  %s1293_s19 = smov %s1035_s20 }
 0x1b5   : > { %s1294_s20 = smov %s1182_s13  ;;  %s1295_s21 = smov %s1043_s22 }
 0x1b6   : > { %s1296_s22 = smov %s1298_s8  ;;  %22 = sbr.rel (!%p20_p4) target bundleno = 8 (0x8), region = 108 }
 0x1bb   :  { %619 = vsyncpa [#allocation4], 1 }
 0x1bc   :  { %621 = vsyncpa [#allocation4 + $0x1], 1 }
 0x1bd   :  { %622 = vsyncpa [#allocation7], 1 }
 0x1be   :  { %623 = vsyncpa [#allocation10], 1 }
 0x1bf   :  { %624 = vsyncpa [#allocation5], 1 }
 0x1c0   :  { %626 = vsyncpa [#allocation5 + $0x1], 1 }

</bundles_post_ra>
